<compile_context>
chip_gen: v7x
topology: tpu7x:2x2x1
jax: 0.10.0
libtpu: 0.0.40
codegen_flags: <defaults>
</compile_context>

<pallas_src>
import functools
import math

import jax
import jax.numpy as jnp
from jax.experimental import pallas as pl
from jax.experimental.pallas import tpu as pltpu

# ---- model config (small, consistent with the module: n_hidden = n_head * attention_size) ----
B = 2          # batch
S = 8          # sequence length
H = 32         # n_hidden
N_HEAD = 4
ATT = H // N_HEAD   # attention_size (= attention_head_size)
EPS = 1e-12


def _albert_mha_kernel(x_ref, w_ref, b_ref, ln_ref, o_ref, *, n_head, eps):
    """Whole forward in one invocation: fused 2D QKV matmul -> head-batched attention ->
    single 2D output projection -> residual -> LayerNorm."""
    bsz, seq, hid = x_ref.shape
    att = hid // n_head
    rows = bsz * seq
    three_h = 3 * hid

    x = x_ref[...]                               # (B, S, H) f32
    x2d = x.reshape(rows, hid)                   # (B*S, H): leading merge only (layout-safe)

    w_all = w_ref[...]                           # (H, 4H) = [Wq*s | Wk | Wv | Wd]
    b_all = b_ref[...]                           # (1, 4H) = [bq*s | bk | bv | bd]
    wqkv = w_all[:, :three_h]                    # (H, 3H)
    wd = w_all[:, three_h:]                      # (H, H)
    bqkv = b_all[:, :three_h]                    # (1, 3H)
    bd = b_all[:, three_h:]                      # (1, H)

    # ---- fused Q|K|V: single (B*S, H) @ (H, 3H) matmul, bf16 operands, f32 accumulation ----
    qkv = jnp.dot(x2d.astype(jnp.bfloat16), wqkv.astype(jnp.bfloat16),
                  preferred_element_type=jnp.float32) + bqkv             # (B*S, 3H) f32
    q2d = qkv[:, :hid]
    k2d = qkv[:, hid:2 * hid]
    v2d = qkv[:, 2 * hid:]

    # ---- repack to head-major groups (NH*B, S, ATT): static lane slices + leading concat ----
    def to_groups(t2d):
        heads = [t2d[:, h * att:(h + 1) * att].reshape(bsz, seq, att)
                 for h in range(n_head)]
        return jnp.concatenate(heads, axis=0)    # group index g = h*B + b

    qg = to_groups(q2d).astype(jnp.bfloat16)
    kg = to_groups(k2d).astype(jnp.bfloat16)
    vg = to_groups(v2d).astype(jnp.bfloat16)

    # Scores: contract the last dims of q and k directly (no k^T materialized);
    # 1/sqrt(attention_size) is already folded into the Q weights/bias.
    score = jax.lax.dot_general(
        qg, kg, dimension_numbers=(((2,), (2,)), ((0,), (0,))),
        preferred_element_type=jnp.float32)      # (G, S, S) f32

    # numerically-stable softmax along the last axis (f32)
    m = jnp.max(score, axis=-1, keepdims=True)
    e = jnp.exp(score - m)
    denom = jnp.sum(e, axis=-1, keepdims=True)
    prob = e * pl.reciprocal(denom, approx=True)          # EUP vrcp slot

    ctx = jax.lax.dot_general(
        prob.astype(jnp.bfloat16), vg,
        dimension_numbers=(((2,), (1,)), ((0,), (0,))),
        preferred_element_type=jnp.float32)      # (G, S, ATT) f32

    # ---- merge heads back to (B*S, H) and run ONE (B*S, H) @ (H, H) output projection ----
    ctx2d = jnp.concatenate(
        [ctx[h * bsz:(h + 1) * bsz].reshape(rows, att) for h in range(n_head)],
        axis=-1)                                 # (B*S, H), lanes in head order (matches Wd rows)
    proj = jnp.dot(ctx2d.astype(jnp.bfloat16), wd.astype(jnp.bfloat16),
                   preferred_element_type=jnp.float32) + bd              # (B*S, H) f32

    # ---- residual + LayerNorm over hidden dim (f32, biased variance like torch.nn.LayerNorm) ----
    y = x2d + proj
    mean = jnp.mean(y, axis=-1, keepdims=True)
    c = y - mean
    var = jnp.mean(c * c, axis=-1, keepdims=True)
    inv_std = jax.lax.rsqrt(var + eps)
    gamma = ln_ref[0:1, :]
    beta = ln_ref[1:2, :]
    out2d = c * inv_std * gamma + beta
    o_ref[...] = out2d.reshape(bsz, seq, hid).astype(o_ref.dtype)


def albert_multi_head_attention(x, packed, *, n_head=N_HEAD, eps=EPS):
    """x: (B, S, H) float32. packed: output of prepare_params. Returns (B, S, H)."""
    w_all, b_all, ln_all = packed
    bsz, seq, hid = x.shape
    operands = (x, w_all, b_all, ln_all)

    def full_spec(a):
        return pl.BlockSpec(a.shape, lambda _: (0,) * a.ndim)

    kernel = functools.partial(_albert_mha_kernel, n_head=n_head, eps=eps)
    return pl.pallas_call(
        kernel,
        out_shape=jax.ShapeDtypeStruct((bsz, seq, hid), jnp.float32),
        grid_spec=pltpu.PrefetchScalarGridSpec(
            num_scalar_prefetch=0,
            grid=(1,),                                     # single invocation: no per-batch grid
            in_specs=[full_spec(a) for a in operands],
            out_specs=pl.BlockSpec((bsz, seq, hid), lambda _: (0, 0, 0)),
        ),
        compiler_params=pltpu.CompilerParams(dimension_semantics=("arbitrary",)),
    )(*operands)


def init_params(key):
    keys = jax.random.split(key, 8)
    scale = 1.0 / math.sqrt(H)

    def lin(kw, kb):
        w = jax.random.uniform(kw, (H, H), jnp.float32, -scale, scale)   # (in, out)
        b = jax.random.uniform(kb, (1, H), jnp.float32, -scale, scale)
        return w, b

    wq, bq = lin(keys[0], keys[1])
    wk, bk = lin(keys[2], keys[3])
    wv, bv = lin(keys[4], keys[5])
    wd, bd = lin(keys[6], keys[7])
    return dict(wq=wq, bq=bq, wk=wk, bk=bk, wv=wv, bv=bv, wd=wd, bd=bd,
                gamma=jnp.ones((1, H), jnp.float32), beta=jnp.zeros((1, H), jnp.float32))


def prepare_params(p, *, n_head=N_HEAD):
    """One-time weight transform (not per-call): fold 1/sqrt(d) into Wq/bq and pack everything
    into three operands: a lane-dense (H, 4H) weight slab, a (1, 4H) bias row, and (2, H) gamma/beta."""
    hid = p["wq"].shape[0]
    att = hid // n_head
    inv_scale = 1.0 / math.sqrt(att)
    w_all = jnp.concatenate([p["wq"] * inv_scale, p["wk"], p["wv"], p["wd"]], axis=1)  # (H, 4H)
    b_all = jnp.concatenate([p["bq"] * inv_scale, p["bk"], p["bv"], p["bd"]], axis=1)  # (1, 4H)
    ln_all = jnp.concatenate([p["gamma"], p["beta"]], axis=0)                          # (2, H)
    return w_all, b_all, ln_all


def reference(x, p):
    """Pure-JAX f32 reference mirroring the PyTorch forward, for a sanity check."""
    q = x @ p["wq"] + p["bq"]
    k = x @ p["wk"] + p["bk"]
    v = x @ p["wv"] + p["bv"]

    def split(t):  # (B,S,H) -> (B, n_head, S, d)
        return t.reshape(B, S, N_HEAD, ATT).transpose(0, 2, 1, 3)

    q, k, v = split(q), split(k), split(v)
    score = jnp.einsum("bhqd,bhkd->bhqk", q, k) / math.sqrt(ATT)
    prob = jax.nn.softmax(score, axis=-1)
    ctx = jnp.einsum("bhqk,bhkd->bhqd", prob, v).transpose(0, 2, 1, 3).reshape(B, S, H)
    proj = ctx @ p["wd"] + p["bd"]
    y = x + proj
    mean = y.mean(-1, keepdims=True)
    var = ((y - mean) ** 2).mean(-1, keepdims=True)
    return (y - mean) / jnp.sqrt(var + EPS) * p["gamma"] + p["beta"]


if __name__ == "__main__":
    key = jax.random.PRNGKey(0)
    kx, kp = jax.random.split(key)
    x = jax.random.normal(kx, (B, S, H), jnp.float32)
    params = init_params(kp)
    packed = prepare_params(params)        # one-time weight transform, outside the hot path

    out = albert_multi_head_attention(x, packed)
    out = jax.block_until_ready(out)

    ref = reference(x, params)
    assert out.shape == (B, S, H)
    # Tolerance relaxed vs pure-f32 because matmul operands are bf16 (MXU-native, f32 accumulate)
    # and the softmax denominator uses the EUP approximate reciprocal.
    err = float(jnp.max(jnp.abs(out - ref)))
    assert jnp.allclose(out, ref, atol=2e-2, rtol=2e-2), err
    print("KERNEL_OK")
</pallas_src>

<mosaic_0001>
module attributes {stable_mosaic.version = 11 : i64} {
  func.func @_albert_mha_kernel(%arg0: i32, %arg1: memref<2x8x32xf32, #tpu.memory_space<vmem>>, %arg2: memref<32x128xf32, #tpu.memory_space<vmem>>, %arg3: memref<1x128xf32, #tpu.memory_space<vmem>>, %arg4: memref<2x32xf32, #tpu.memory_space<vmem>>, %arg5: memref<2x8x32xf32, #tpu.memory_space<vmem>>) attributes {dimension_semantics = [#tpu.dimension_semantics<arbitrary>], iteration_bounds = array<i64: 1>, scalar_prefetch = 0 : i64, scratch_operands = 0 : i64, tpu.core_type = #tpu.core_type<tc>, window_params = [{pipeline_mode = #tpu.pipeline_mode<synchronous>, transform_indices = @transform_0, window_bounds = array<i64: 2, 8, 32>}, {pipeline_mode = #tpu.pipeline_mode<synchronous>, transform_indices = @transform_1, window_bounds = array<i64: 32, 128>}, {pipeline_mode = #tpu.pipeline_mode<synchronous>, transform_indices = @transform_2, window_bounds = array<i64: 1, 128>}, {pipeline_mode = #tpu.pipeline_mode<synchronous>, transform_indices = @transform_3, window_bounds = array<i64: 2, 32>}, {pipeline_mode = #tpu.pipeline_mode<synchronous>, transform_indices = @transform_4, window_bounds = array<i64: 2, 8, 32>}]} {
    %c0 = arith.constant 0 : index
    %c0_0 = arith.constant 0 : index
    %c0_1 = arith.constant 0 : index
    %0 = vector.load %arg1[%c0, %c0_0, %c0_1] : memref<2x8x32xf32, #tpu.memory_space<vmem>>, vector<2x8x32xf32>
    %1 = vector.shape_cast %0 : vector<2x8x32xf32> to vector<16x32xf32>
    %c0_2 = arith.constant 0 : index
    %c0_3 = arith.constant 0 : index
    %2 = vector.load %arg2[%c0_2, %c0_3] : memref<32x128xf32, #tpu.memory_space<vmem>>, vector<32x128xf32>
    %c0_4 = arith.constant 0 : index
    %c0_5 = arith.constant 0 : index
    %3 = vector.load %arg3[%c0_4, %c0_5] : memref<1x128xf32, #tpu.memory_space<vmem>>, vector<1x128xf32>
    %4 = vector.extract_strided_slice %2 {offsets = [0, 0], sizes = [32, 96], strides = [1, 1]} : vector<32x128xf32> to vector<32x96xf32>
    %5 = vector.extract_strided_slice %2 {offsets = [0, 96], sizes = [32, 32], strides = [1, 1]} : vector<32x128xf32> to vector<32x32xf32>
    %6 = vector.extract_strided_slice %3 {offsets = [0, 0], sizes = [1, 96], strides = [1, 1]} : vector<1x128xf32> to vector<1x96xf32>
    %7 = vector.extract_strided_slice %3 {offsets = [0, 96], sizes = [1, 32], strides = [1, 1]} : vector<1x128xf32> to vector<1x32xf32>
    %8 = arith.truncf %1 : vector<16x32xf32> to vector<16x32xbf16>
    %9 = arith.truncf %4 : vector<32x96xf32> to vector<32x96xbf16>
    %cst = arith.constant dense<0.000000e+00> : vector<16x96xf32>
    %10 = tpu.matmul %8, %9, %cst {dimension_numbers = #tpu.dot_dimension_numbers<[1], [0], [0], [1], [0, 0, 1, 1], [], []>} : vector<16x32xbf16>, vector<32x96xbf16>, vector<16x96xf32> -> vector<16x96xf32>
    %11 = vector.broadcast %6 : vector<1x96xf32> to vector<16x96xf32>
    %12 = arith.addf %10, %11 : vector<16x96xf32>
    %13 = vector.extract_strided_slice %12 {offsets = [0, 0], sizes = [16, 32], strides = [1, 1]} : vector<16x96xf32> to vector<16x32xf32>
    %14 = vector.extract_strided_slice %12 {offsets = [0, 32], sizes = [16, 32], strides = [1, 1]} : vector<16x96xf32> to vector<16x32xf32>
    %15 = vector.extract_strided_slice %12 {offsets = [0, 64], sizes = [16, 32], strides = [1, 1]} : vector<16x96xf32> to vector<16x32xf32>
    %16 = vector.extract_strided_slice %13 {offsets = [0, 0], sizes = [16, 8], strides = [1, 1]} : vector<16x32xf32> to vector<16x8xf32>
    %17 = vector.shape_cast %16 : vector<16x8xf32> to vector<2x8x8xf32>
    %18 = vector.extract_strided_slice %13 {offsets = [0, 8], sizes = [16, 8], strides = [1, 1]} : vector<16x32xf32> to vector<16x8xf32>
    %19 = vector.shape_cast %18 : vector<16x8xf32> to vector<2x8x8xf32>
    %20 = vector.extract_strided_slice %13 {offsets = [0, 16], sizes = [16, 8], strides = [1, 1]} : vector<16x32xf32> to vector<16x8xf32>
    %21 = vector.shape_cast %20 : vector<16x8xf32> to vector<2x8x8xf32>
    %22 = vector.extract_strided_slice %13 {offsets = [0, 24], sizes = [16, 8], strides = [1, 1]} : vector<16x32xf32> to vector<16x8xf32>
    %23 = vector.shape_cast %22 : vector<16x8xf32> to vector<2x8x8xf32>
    %24 = tpu.concatenate %17, %19, %21, %23 in 0 : vector<2x8x8xf32>, vector<2x8x8xf32>, vector<2x8x8xf32>, vector<2x8x8xf32> -> vector<8x8x8xf32>
    %25 = arith.truncf %24 : vector<8x8x8xf32> to vector<8x8x8xbf16>
    %26 = vector.extract_strided_slice %14 {offsets = [0, 0], sizes = [16, 8], strides = [1, 1]} : vector<16x32xf32> to vector<16x8xf32>
    %27 = vector.shape_cast %26 : vector<16x8xf32> to vector<2x8x8xf32>
    %28 = vector.extract_strided_slice %14 {offsets = [0, 8], sizes = [16, 8], strides = [1, 1]} : vector<16x32xf32> to vector<16x8xf32>
    %29 = vector.shape_cast %28 : vector<16x8xf32> to vector<2x8x8xf32>
    %30 = vector.extract_strided_slice %14 {offsets = [0, 16], sizes = [16, 8], strides = [1, 1]} : vector<16x32xf32> to vector<16x8xf32>
    %31 = vector.shape_cast %30 : vector<16x8xf32> to vector<2x8x8xf32>
    %32 = vector.extract_strided_slice %14 {offsets = [0, 24], sizes = [16, 8], strides = [1, 1]} : vector<16x32xf32> to vector<16x8xf32>
    %33 = vector.shape_cast %32 : vector<16x8xf32> to vector<2x8x8xf32>
    %34 = tpu.concatenate %27, %29, %31, %33 in 0 : vector<2x8x8xf32>, vector<2x8x8xf32>, vector<2x8x8xf32>, vector<2x8x8xf32> -> vector<8x8x8xf32>
    %35 = arith.truncf %34 : vector<8x8x8xf32> to vector<8x8x8xbf16>
    %36 = vector.extract_strided_slice %15 {offsets = [0, 0], sizes = [16, 8], strides = [1, 1]} : vector<16x32xf32> to vector<16x8xf32>
    %37 = vector.shape_cast %36 : vector<16x8xf32> to vector<2x8x8xf32>
    %38 = vector.extract_strided_slice %15 {offsets = [0, 8], sizes = [16, 8], strides = [1, 1]} : vector<16x32xf32> to vector<16x8xf32>
    %39 = vector.shape_cast %38 : vector<16x8xf32> to vector<2x8x8xf32>
    %40 = vector.extract_strided_slice %15 {offsets = [0, 16], sizes = [16, 8], strides = [1, 1]} : vector<16x32xf32> to vector<16x8xf32>
    %41 = vector.shape_cast %40 : vector<16x8xf32> to vector<2x8x8xf32>
    %42 = vector.extract_strided_slice %15 {offsets = [0, 24], sizes = [16, 8], strides = [1, 1]} : vector<16x32xf32> to vector<16x8xf32>
    %43 = vector.shape_cast %42 : vector<16x8xf32> to vector<2x8x8xf32>
    %44 = tpu.concatenate %37, %39, %41, %43 in 0 : vector<2x8x8xf32>, vector<2x8x8xf32>, vector<2x8x8xf32>, vector<2x8x8xf32> -> vector<8x8x8xf32>
    %45 = arith.truncf %44 : vector<8x8x8xf32> to vector<8x8x8xbf16>
    %cst_6 = arith.constant dense<0.000000e+00> : vector<8x8x8xf32>
    %46 = tpu.matmul %25, %35, %cst_6 {dimension_numbers = #tpu.dot_dimension_numbers<[2], [2], [1], [1], [0, 0, 0, 1, 1, 1], [0], [0]>} : vector<8x8x8xbf16>, vector<8x8x8xbf16>, vector<8x8x8xf32> -> vector<8x8x8xf32>
    %cst_7 = arith.constant dense<0xFF800000> : vector<8x8xf32>
    %47 = vector.multi_reduction <maximumf>, %46, %cst_7 [2] : vector<8x8x8xf32> to vector<8x8xf32>
    %48 = vector.shape_cast %47 : vector<8x8xf32> to vector<8x8x1xf32>
    %49 = vector.broadcast %48 : vector<8x8x1xf32> to vector<8x8x8xf32>
    %50 = arith.subf %46, %49 : vector<8x8x8xf32>
    %51 = math.exp %50 : vector<8x8x8xf32>
    %cst_8 = arith.constant dense<0.000000e+00> : vector<8x8xf32>
    %52 = vector.multi_reduction <add>, %51, %cst_8 [2] : vector<8x8x8xf32> to vector<8x8xf32>
    %53 = vector.shape_cast %52 : vector<8x8xf32> to vector<8x8x1xf32>
    %54 = tpu.reciprocal %53 {approx = true} : vector<8x8x1xf32> -> vector<8x8x1xf32>
    %55 = vector.broadcast %54 : vector<8x8x1xf32> to vector<8x8x8xf32>
    %56 = arith.mulf %51, %55 : vector<8x8x8xf32>
    %57 = arith.truncf %56 : vector<8x8x8xf32> to vector<8x8x8xbf16>
    %cst_9 = arith.constant dense<0.000000e+00> : vector<8x8x8xf32>
    %58 = tpu.matmul %57, %45, %cst_9 {dimension_numbers = #tpu.dot_dimension_numbers<[2], [1], [1], [2], [0, 0, 0, 1, 1, 2], [0], [0]>} : vector<8x8x8xbf16>, vector<8x8x8xbf16>, vector<8x8x8xf32> -> vector<8x8x8xf32>
    %59 = vector.extract_strided_slice %58 {offsets = [0, 0, 0], sizes = [2, 8, 8], strides = [1, 1, 1]} : vector<8x8x8xf32> to vector<2x8x8xf32>
    %60 = vector.shape_cast %59 : vector<2x8x8xf32> to vector<16x8xf32>
    %61 = vector.extract_strided_slice %58 {offsets = [2, 0, 0], sizes = [2, 8, 8], strides = [1, 1, 1]} : vector<8x8x8xf32> to vector<2x8x8xf32>
    %62 = vector.shape_cast %61 : vector<2x8x8xf32> to vector<16x8xf32>
    %63 = vector.extract_strided_slice %58 {offsets = [4, 0, 0], sizes = [2, 8, 8], strides = [1, 1, 1]} : vector<8x8x8xf32> to vector<2x8x8xf32>
    %64 = vector.shape_cast %63 : vector<2x8x8xf32> to vector<16x8xf32>
    %65 = vector.extract_strided_slice %58 {offsets = [6, 0, 0], sizes = [2, 8, 8], strides = [1, 1, 1]} : vector<8x8x8xf32> to vector<2x8x8xf32>
    %66 = vector.shape_cast %65 : vector<2x8x8xf32> to vector<16x8xf32>
    %67 = tpu.concatenate %60, %62, %64, %66 in 1 : vector<16x8xf32>, vector<16x8xf32>, vector<16x8xf32>, vector<16x8xf32> -> vector<16x32xf32>
    %68 = arith.truncf %67 : vector<16x32xf32> to vector<16x32xbf16>
    %69 = arith.truncf %5 : vector<32x32xf32> to vector<32x32xbf16>
    %cst_10 = arith.constant dense<0.000000e+00> : vector<16x32xf32>
    %70 = tpu.matmul %68, %69, %cst_10 {dimension_numbers = #tpu.dot_dimension_numbers<[1], [0], [0], [1], [0, 0, 1, 1], [], []>} : vector<16x32xbf16>, vector<32x32xbf16>, vector<16x32xf32> -> vector<16x32xf32>
    %71 = vector.broadcast %7 : vector<1x32xf32> to vector<16x32xf32>
    %72 = arith.addf %70, %71 : vector<16x32xf32>
    %73 = arith.addf %1, %72 : vector<16x32xf32>
    %cst_11 = arith.constant dense<0.000000e+00> : vector<16xf32>
    %74 = vector.multi_reduction <add>, %73, %cst_11 [1] : vector<16x32xf32> to vector<16xf32>
    %75 = vector.shape_cast %74 : vector<16xf32> to vector<16x1xf32>
    %cst_12 = arith.constant 3.200000e+01 : f32
    %76 = vector.broadcast %cst_12 : f32 to vector<16x1xf32>
    %77 = arith.divf %75, %76 : vector<16x1xf32>
    %78 = vector.broadcast %77 : vector<16x1xf32> to vector<16x32xf32>
    %79 = arith.subf %73, %78 : vector<16x32xf32>
    %80 = arith.mulf %79, %79 : vector<16x32xf32>
    %cst_13 = arith.constant dense<0.000000e+00> : vector<16xf32>
    %81 = vector.multi_reduction <add>, %80, %cst_13 [1] : vector<16x32xf32> to vector<16xf32>
    %82 = vector.shape_cast %81 : vector<16xf32> to vector<16x1xf32>
    %cst_14 = arith.constant 3.200000e+01 : f32
    %83 = vector.broadcast %cst_14 : f32 to vector<16x1xf32>
    %84 = arith.divf %82, %83 : vector<16x1xf32>
    %cst_15 = arith.constant 9.99999996E-13 : f32
    %85 = vector.broadcast %cst_15 : f32 to vector<16x1xf32>
    %86 = arith.addf %84, %85 : vector<16x1xf32>
    %87 = math.rsqrt %86 : vector<16x1xf32>
    %c0_16 = arith.constant 0 : index
    %c0_17 = arith.constant 0 : index
    %88 = vector.load %arg4[%c0_16, %c0_17] : memref<2x32xf32, #tpu.memory_space<vmem>>, vector<1x32xf32>
    %c1 = arith.constant 1 : index
    %c0_18 = arith.constant 0 : index
    %89 = vector.load %arg4[%c1, %c0_18] : memref<2x32xf32, #tpu.memory_space<vmem>>, vector<1x32xf32>
    %90 = vector.broadcast %87 : vector<16x1xf32> to vector<16x32xf32>
    %91 = arith.mulf %79, %90 : vector<16x32xf32>
    %92 = vector.broadcast %88 : vector<1x32xf32> to vector<16x32xf32>
    %93 = arith.mulf %91, %92 : vector<16x32xf32>
    %94 = vector.broadcast %89 : vector<1x32xf32> to vector<16x32xf32>
    %95 = arith.addf %93, %94 : vector<16x32xf32>
    %96 = vector.shape_cast %95 : vector<16x32xf32> to vector<2x8x32xf32>
    %c0_19 = arith.constant 0 : index
    %c0_20 = arith.constant 0 : index
    %c0_21 = arith.constant 0 : index
    %97 = vector.load %arg5[%c0_19, %c0_20, %c0_21] : memref<2x8x32xf32, #tpu.memory_space<vmem>>, vector<2x8x32xf32>
    tpu.vector_store %arg5[%c0_19, %c0_20, %c0_21], %96 {strides = array<i32>} : memref<2x8x32xf32, #tpu.memory_space<vmem>>, vector<2x8x32xf32>,
    return
  }
  func.func @transform_0(%arg0: i32) -> (i32, i32, i32) {
    %c0_i32 = arith.constant 0 : i32
    %c0_i32_0 = arith.constant 0 : i32
    %c0_i32_1 = arith.constant 0 : i32
    %c0_i32_2 = arith.constant 0 : i32
    return %c0_i32, %c0_i32_0, %c0_i32_1 : i32, i32, i32
  }
  func.func @transform_1(%arg0: i32) -> (i32, i32) {
    %c0_i32 = arith.constant 0 : i32
    %c0_i32_0 = arith.constant 0 : i32
    %c0_i32_1 = arith.constant 0 : i32
    return %c0_i32, %c0_i32_0 : i32, i32
  }
  func.func @transform_2(%arg0: i32) -> (i32, i32) {
    %c0_i32 = arith.constant 0 : i32
    %c0_i32_0 = arith.constant 0 : i32
    %c0_i32_1 = arith.constant 0 : i32
    return %c0_i32, %c0_i32_0 : i32, i32
  }
  func.func @transform_3(%arg0: i32) -> (i32, i32) {
    %c0_i32 = arith.constant 0 : i32
    %c0_i32_0 = arith.constant 0 : i32
    %c0_i32_1 = arith.constant 0 : i32
    return %c0_i32, %c0_i32_0 : i32, i32
  }
  func.func @transform_4(%arg0: i32) -> (i32, i32, i32) {
    %c0_i32 = arith.constant 0 : i32
    %c0_i32_0 = arith.constant 0 : i32
    %c0_i32_1 = arith.constant 0 : i32
    %c0_i32_2 = arith.constant 0 : i32
    return %c0_i32, %c0_i32_0, %c0_i32_1 : i32, i32, i32
  }
}

</mosaic_0001>

<bundles_post_ra>
// kernel: tpu_custom_call.1
= control target key start
LH: loop header
LB: loop body
LE: loop exit
PB: predicated region body
PF: predicated region fallthrough
CT: control target
= control target key end

     0   :  { %9 = vsyncpa [#allocation3], 0  ;;  %s1796_s0 = inlined_call_operand.hbm [shape: f32[2,8,32], index: 0, kind: input, shape index: {}]   ;;  %s1797_s1 = inlined_call_operand.hbm [shape: f32[32,128], index: 1, kind: input, shape index: {}]   ;;  %s1798_s2 = inlined_call_operand.vmem [shape: f32[1,128], index: 2, kind: input, shape index: {}]   ;;  %s1799_s3 = inlined_call_operand.vmem [shape: f32[2,32], index: 3, kind: input, shape index: {}]   ;;  %s1800_s4 = inlined_call_operand.hbm [shape: f32[2,8,32], index: 4, kind: output, shape index: {}]  }
   0x1   :  { %10 = vsyncpa [#allocation6], 0 }
   0x2   :  { %11 = vsyncpa [#allocation4], 0  ;;  %s1485_s15 = smov [#allocation2]   ;;  %s1413_s19 = scalar_lea.hbm %s1796_s0, 256 }
   0x3   :  { %s17_s16 = sshll.u32 %s1485_s15, 4  ;;  %p1414_p0 = scmp.ne.s32.totalorder %s1796_s0, %s1413_s19  ;;  %s18_s16 = int_to_ptr.vmem [resolvable:$true] %s17_s16 }
   0x4   :  { %p1417_p1 = scmp.lt.u32.totalorder %s1413_s19, %s1796_s0 }
   0x6   :  { %p1419_p2 = pnand %p1417_p1, %p1414_p0 }
   0x8   :  { %1422 = shalt.err (!%p1419_p2)
}
   0x9   :  { %s1423_s24 = scalar_lea.vmem %s18_s16, 256  ;;  %p1428_p4 = scmp.lt.s32.totalorder %s18_s16, %s18_s16 }
   0xa   :  { %p1424_p3 = scmp.ne.s32.totalorder %s18_s16, %s1423_s24  ;;  %p1429_p5 = scmp.lt.s32.totalorder %s1423_s24, %s1423_s24 }
   0xc   :  { %p1430_p6 = por %p1429_p5, %p1428_p4 }
   0xe   :  { %p1431_p7 = pnand %p1430_p6, %p1424_p3 }
  0x10   :  { %1434 = shalt.err (!%p1431_p7)
}
  0x11   :  { %s1486_s25 = smov 128   ;;  %s1487_s26 = smov 8  }
  0x12   :  { %23 = dma.hbm_to_vmem [thread:$0]  %s1796_s0, 256, %s18_s16, [#allocation3], %s1486_s25, %s1486_s25, %s1487_s26  }
  0x13   :  { %s1488_s29 = smov [#allocation5]   ;;  %s1435_s7 = scalar_lea.hbm %s1797_s1, 512 }
  0x14   :  { %s29_s30 = sshll.u32 %s1488_s29, 4  ;;  %p1436_p8 = scmp.ne.s32.totalorder %s1797_s1, %s1435_s7  ;;  %s30_s30 = int_to_ptr.vmem [resolvable:$true] %s29_s30 }
  0x15   :  { %p1439_p9 = scmp.lt.u32.totalorder %s1435_s7, %s1797_s1 }
  0x17   :  { %p1441_p10 = pnand %p1439_p9, %p1436_p8 }
  0x19   :  { %1444 = shalt.err (!%p1441_p10)
}
  0x1a   :  { %s1445_s12 = scalar_lea.vmem %s30_s30, 512  ;;  %p1450_p12 = scmp.lt.s32.totalorder %s30_s30, %s30_s30 }
  0x1b   :  { %p1446_p11 = scmp.ne.s32.totalorder %s30_s30, %s1445_s12  ;;  %p1451_p13 = scmp.lt.s32.totalorder %s1445_s12, %s1445_s12 }
  0x1d   :  { %p1452_p0 = por %p1451_p13, %p1450_p12 }
  0x1f   :  { %p1453_p1 = pnand %p1452_p0, %p1446_p11 }
  0x21   :  { %1456 = shalt.err (!%p1453_p1)
}
  0x22   :  { %35 = dma.hbm_to_vmem [thread:$0]  %s1797_s1, 512, %s30_s30, [#allocation6], %s1486_s25, %s1486_s25, %s1487_s26  }
  0x23   :  { %1479 = dma.done.wait [#allocation3], 256  }
  0x24   :  { %1480 = vsyncadd [#allocation3], 4294967040 }
  0x25   :  { %1481 = dma.done.wait [#allocation6], 512  }
  0x26   :  { %1482 = vsyncadd [#allocation6], 4294966784  ;;  %v1489_v0 = vmov 0.0   ;;  %vm1490_vm0 = vmmov 0   ;;  %v49_v1 = vld [vmem:[#allocation5] sm:$0xff]  ;;  %v50_v2 = vld [vmem:[#allocation5 + $0x8] sm:$0xff] }
  0x27   :  { %1220 = vmatprep.subr.bf16.mxu0 %v1489_v0  ;;  %1224 = vmatprep.mubr.msk.bf16.mxu0 %vm1490_vm0, %v1489_v0  ;;  %v51_v3 = vld [vmem:[#allocation5 + $0x10] sm:$0xff]  ;;  %v1561_v4 = vpack.c.bf16 %v50_v2, %v49_v1  ;;  %v52_v5 = vld [vmem:[#allocation5 + $0x18] sm:$0xff]  ;;  %vm63_vm1 = vcmask 261120   ;;  %s1491_s15 = smov 104   ;;  %s1492_s16 = smov 120   ;;  %vm139_vm2 = vcmask 64512  }
  0x28   :  { %1228 = vmatprep.subr.bf16.mxu1 %v1489_v0  ;;  %1230 = vmatprep.mubr.msk.bf16.mxu1 %vm1490_vm0, %v1489_v0  ;;  %v1564_v6 = vpack.c.bf16 %v52_v5, %v51_v3  ;;  %v1566_v7 = vld [vmem:[#allocation2] sm:$0xff]  ;;  %v1568_v8 = vld [vmem:[#allocation2 + $0x8] sm:$0xff]  ;;  %s1493_s17 = smov 96   ;;  %s1494_s18 = smov 112   ;;  %vm630_vm3 = vcmask 1043456   ;;  %vm1036_vm4 = vcmask 130048  }
  0x29   :  { %1221 = vmatpush3.bf16.msra.mxu0 %v1561_v4  ;;  %v54_v9 = vpack.c.bf16 %v1568_v8, %v1566_v7  ;;  %v1581_v10 = vld [vmem:[%s1798_s2] ss:$0 sm:$0xff]  ;;  %s1495_s2 = smov 64   ;;  %s1496_s19 = smov 32   ;;  %vm1039_vm5 = vcmask 195584  }
  0x2a   :  { %1222 = vmatprep.subr.bf16.mxu0 %v1489_v0  ;;  %s1497_s20 = smov 16   ;;  %s1498_s21 = smov 24  }
  0x2b   :  { %s1499_s28 = smov [#allocation7]  }
  0x2c   :  { %s1148_s29 = sshll.u32 %s1499_s28, 4  ;;  %s1149_s29 = int_to_ptr.vmem [resolvable:$true] %s1148_s29 }
  0x2d   :  { %1223 = vmatpush3.bf16.msra.mxu0 %v1564_v6  ;;  %s1457_s30 = scalar_lea.vmem %s1149_s29, 256  ;;  %p1462_p3 = scmp.lt.s32.totalorder %s1149_s29, %s1149_s29 }
  0x2e   :  { %1234 = vmatprep.subr.bf16.mxu0 %v1489_v0  ;;  %p1458_p2 = scmp.ne.s32.totalorder %s1149_s29, %s1457_s30  ;;  %p1463_p4 = scmp.lt.s32.totalorder %s1457_s30, %s1457_s30 }
  0x30   :  { %1225 = vmatmul.mubr.msk.bf16.vlgmr.msra.gmra.mrb[0].mxu0 %vm63_vm1, %v54_v9  ;;  %p1464_p5 = por %p1463_p4, %p1462_p3 }
  0x31   :  { %1236 = vmatprep.mubr.msk.bf16.mxu0 %vm1490_vm0, %v1489_v0 }
  0x32   :  { %p1465_p6 = pnand %p1464_p5, %p1458_p2 }
 0x103   :  { %v101_v11 = vpop.f32.mrb[0].mxu0 }
 0x104   :  { %v1226_v12 = vpop.f32.mrb[1].mxu0  ;;  %v102_v14 = vadd.f32 %v1581_v10, %v101_v11 }
 0x105   :  { %v104_v13 = vpop.f32.mrb[2].mxu0 }
 0x106   :  { %v105_v15 = vadd.f32 %v1581_v10, %v104_v13  ;;  %v1227_v16 = vpop.f32.mrb[3].mxu0  ;;  %v128_v18 = vpack.c.bf16 %v102_v14, %v102_v14 }
 0x108   :  { %v1357_v17 = vpack.i.bf16 %v105_v15, %v102_v14  ;;  %v129_v19 = vpack.c.bf16 %v105_v15, %v105_v15 }
 0x10a   :  { %1358 = vrot.lane.b32.xlu1 %v1357_v17, %s1491_s15  ;;  %1348 = vrot.lane.b32.xlu0 %v1357_v17, %s1492_s16 }
 0x10e   :  { %137 = vrot.lane.b32.xlu1 %v128_v18, %s1493_s17  ;;  %1353 = vrot.lane.b32.xlu0 %v1357_v17, %s1494_s18 }
 0x112   :  { %187 = vrot.lane.b32.xlu0 %v129_v19, %s1493_s17 }
 0x17c   :  { %v1359_v20 = vpop.permute.xlu1 %1358  ;;  %v1349_v21 = vpop.permute.xlu0 %1348 }
 0x17d   :  { %v1351_v22 = vunpack.i.h.bf16 %v1349_v21  ;;  %v1350_v23 = vunpack.i.l.bf16 %v1349_v21  ;;  %v1360_v31 = vunpack.i.l.bf16 %v1359_v20  ;;  %v1361_v34 = vunpack.i.h.bf16 %v1359_v20 }
 0x17f   :  { %v1587_v24 = vpack.c.bf16 %v1351_v22, %v1351_v22  ;;  %v1589_v25 = vpack.c.bf16 %v1350_v23, %v1350_v23  ;;  %v1606_v37 = vpack.c.bf16 %v1360_v31, %v1360_v31  ;;  %v1609_v38 = vpack.c.bf16 %v1361_v34, %v1361_v34 }
 0x180   :  { %v138_v26 = vpop.permute.xlu1 %137  ;;  %v1354_v27 = vpop.permute.xlu0 %1353 }
 0x181   :  { %v1356_v28 = vunpack.i.h.bf16 %v1354_v27  ;;  %v1355_v29 = vunpack.i.l.bf16 %v1354_v27  ;;  %236 = vrot.lane.b32.xlu1 %v1589_v25, %s1493_s17  ;;  %285 = vrot.lane.b32.xlu0 %v1587_v24, %s1493_s17  ;;  %v144_v30 = vsel %vm139_vm2, %v138_v26, 0 }
 0x182   :  { %1229 = vmatpush3.bf16.xpose.msra.mxu1 %v144_v30 }
 0x183   :  { %v1596_v32 = vpack.c.bf16 %v1356_v28, %v1356_v28  ;;  %v1598_v33 = vpack.c.bf16 %v1355_v29, %v1355_v29  ;;  %1240 = vmatprep.subr.bf16.mxu1 %v1489_v0 }
 0x184   :  { %v188_v35 = vpop.permute.xlu0 %187 }
 0x185   :  { %v193_v36 = vsel %vm139_vm2, %v188_v35, 0  ;;  %334 = vrot.lane.b32.xlu1 %v1598_v33, %s1493_s17  ;;  %383 = vrot.lane.b32.xlu0 %v1596_v32, %s1493_s17 }
 0x186   :  { %1235 = vmatpush3.bf16.xpose.msra.mxu0 %v193_v36 }
 0x187   :  { %1246 = vmatprep.subr.bf16.mxu0 %v1489_v0 }
 0x189   :  { %1231 = vmatmul.mubr.msk.bf16.vlgmr.msra.gmra.mrb[0].mxu1 %vm139_vm2, %v128_v18  ;;  %432 = vrot.lane.b32.xlu1 %v1606_v37, %s1493_s17 }
 0x18a   :  { %481 = vrot.lane.b32.xlu0 %v1609_v38, %s1493_s17  ;;  %1242 = vmatprep.mubr.msk.bf16.mxu1 %vm1490_vm0, %v1489_v0 }
 0x18d   :  { %674 = vrot.lane.b32.xlu1 %v129_v19, %s1495_s2  ;;  %1237 = vmatmul.mubr.msk.bf16.vlgmr.msra.gmra.mrb[4].mxu0 %vm139_vm2, %v129_v19 }
 0x18e   :  { %625 = vrot.lane.b32.xlu0 %v128_v18, %s1495_s2  ;;  %1248 = vmatprep.mubr.msk.bf16.mxu0 %vm1490_vm0, %v1489_v0 }
 0x1f3   :  { %v237_v39 = vpop.permute.xlu1 %236  ;;  %v286_v40 = vpop.permute.xlu0 %285 }
 0x1f4   :  { %v242_v41 = vsel %vm139_vm2, %v237_v39, 0  ;;  %v291_v42 = vsel %vm139_vm2, %v286_v40, 0 }
 0x1f5   :  { %1241 = vmatpush3.bf16.xpose.msra.mxu1 %v242_v41  ;;  %1247 = vmatpush3.bf16.xpose.msra.mxu0 %v291_v42 }
 0x1f6   :  { %1252 = vmatprep.subr.bf16.mxu1 %v1489_v0  ;;  %1258 = vmatprep.subr.bf16.mxu0 %v1489_v0 }
 0x1f7   :  { %v335_v43 = vpop.permute.xlu1 %334  ;;  %v384_v44 = vpop.permute.xlu0 %383 }
 0x1f8   :  { %v340_v45 = vsel %vm139_vm2, %v335_v43, 0  ;;  %v389_v46 = vsel %vm139_vm2, %v384_v44, 0 }
 0x1fb   :  { %v433_v47 = vpop.permute.xlu1 %432 }
 0x1fc   :  { %1243 = vmatmul.mubr.msk.bf16.vlgmr.msra.gmra.mrb[4].mxu1 %vm139_vm2, %v1589_v25  ;;  %1249 = vmatmul.mubr.msk.bf16.vlgmr.msra.gmra.mrb[8].mxu0 %vm139_vm2, %v1587_v24  ;;  %v482_v48 = vpop.permute.xlu0 %481  ;;  %v438_v49 = vsel %vm139_vm2, %v433_v47, 0 }
 0x1fd   :  { %1253 = vmatpush3.bf16.xpose.msra.mxu1 %v340_v45  ;;  %1259 = vmatpush3.bf16.xpose.msra.mxu0 %v389_v46  ;;  %v487_v50 = vsel %vm139_vm2, %v482_v48, 0 }
 0x1fe   :  { %1254 = vmatprep.mubr.msk.bf16.mxu1 %vm1490_vm0, %v1489_v0  ;;  %1260 = vmatprep.mubr.msk.bf16.mxu0 %vm1490_vm0, %v1489_v0 }
 0x1ff   :  { %1264 = vmatprep.subr.bf16.mxu1 %v1489_v0  ;;  %1270 = vmatprep.subr.bf16.mxu0 %v1489_v0  ;;  %v675_v51 = vpop.permute.xlu1 %674 }
 0x200   :  { %v626_v52 = vpop.permute.xlu0 %625  ;;  %v680_v53 = vsel %vm630_vm3, %v675_v51, 0 }
 0x201   :  { %v632_v54 = vsel %vm630_vm3, %v626_v52, 0 }
 0x204   :  { %1255 = vmatmul.mubr.msk.bf16.vlgmr.msra.gmra.mrb[8].mxu1 %vm139_vm2, %v1598_v33  ;;  %1261 = vmatmul.mubr.msk.bf16.vlgmr.msra.gmra.mrb[12].mxu0 %vm139_vm2, %v1596_v32 }
 0x205   :  { %1265 = vmatpush3.bf16.xpose.msra.mxu1 %v438_v49  ;;  %1271 = vmatpush3.bf16.xpose.msra.mxu0 %v487_v50 }
 0x206   :  { %1266 = vmatprep.mubr.msk.bf16.mxu1 %vm1490_vm0, %v1489_v0  ;;  %1272 = vmatprep.mubr.msk.bf16.mxu0 %vm1490_vm0, %v1489_v0 }
 0x207   :  { %1276 = vmatprep.subr.bf16.mxu1 %v1489_v0  ;;  %1282 = vmatprep.subr.bf16.mxu0 %v1489_v0 }
 0x20c   :  { %1267 = vmatmul.mubr.msk.bf16.vlgmr.msra.gmra.mrb[12].mxu1 %vm139_vm2, %v1606_v37  ;;  %1273 = vmatmul.mubr.msk.bf16.vlgmr.msra.gmra.mrb[16].mxu0 %vm139_vm2, %v1609_v38 }
 0x20d   :  { %1277 = vmatpush3.bf16.msra.mxu1 %v632_v54  ;;  %1283 = vmatpush3.bf16.msra.mxu0 %v680_v53 }
 0x20e   :  { %1278 = vmatprep.mubr.msk.bf16.mxu1 %vm1490_vm0, %v1489_v0  ;;  %1284 = vmatprep.mubr.msk.bf16.mxu0 %vm1490_vm0, %v1489_v0 }
 0x20f   :  { %1288 = vmatprep.subr.bf16.mxu1 %v1489_v0  ;;  %1294 = vmatprep.subr.bf16.mxu0 %v1489_v0 }
 0x25c   :  { %v180_v55 = vpop.f32.mrb[0].mxu1 }
 0x25d   :  { %v1232_v56 = vpop.f32.mrb[1].mxu1  ;;  %v529_v57 = vsel %vm139_vm2, %v180_v55, -inf }
 0x25e   :  { %v183_v58 = vpop.f32.mrb[2].mxu1  ;;  %530 = vmax.xlane.f32.xlu1 %v529_v57 }
 0x25f   :  { %v1233_v59 = vpop.f32.mrb[3].mxu1 }
 0x260   :  { %v229_v60 = vpop.f32.mrb[4].mxu0 }
 0x261   :  { %v1238_v61 = vpop.f32.mrb[5].mxu0  ;;  %v532_v62 = vsel %vm139_vm2, %v229_v60, -inf }
 0x262   :  { %533 = vmax.xlane.f32.xlu0 %v532_v62  ;;  %v232_v63 = vpop.f32.mrb[6].mxu0 }
 0x263   :  { %v1239_v1 = vpop.f32.mrb[7].mxu0 }
 0x2cf   :  { %v278_v2 = vpop.f32.mrb[4].mxu1  ;;  %v327_v3 = vpop.f32.mrb[8].mxu0 }
 0x2d0   :  { %v1244_v5 = vpop.f32.mrb[5].mxu1  ;;  %v1250_v9 = vpop.f32.mrb[9].mxu0  ;;  %v535_v11 = vsel %vm139_vm2, %v278_v2, -inf  ;;  %v538_v12 = vsel %vm139_vm2, %v327_v3, -inf }
 0x2d1   :  { %v281_v13 = vpop.f32.mrb[6].mxu1  ;;  %536 = vmax.xlane.f32.xlu0 %v535_v11  ;;  %539 = vmax.xlane.f32.xlu1 %v538_v12  ;;  %v330_v14 = vpop.f32.mrb[10].mxu0 }
 0x2d2   :  { %v1245_v15 = vpop.f32.mrb[7].mxu1  ;;  %v1251_v16 = vpop.f32.mrb[11].mxu0 }
 0x2d7   :  { %v1667_v17 = vpop.f32.mrb[8].mxu1  ;;  %v425_v18 = vpop.f32.mrb[12].mxu0 }
 0x2d8   :  { %v1256_v19 = vpop.f32.mrb[9].mxu1  ;;  %v1262_v20 = vpop.f32.mrb[13].mxu0  ;;  %v541_v21 = vsel %vm139_vm2, %v1667_v17, -inf  ;;  %v544_v22 = vsel %vm139_vm2, %v425_v18, -inf }
 0x2d9   :  { %v379_v23 = vpop.f32.mrb[10].mxu1  ;;  %542 = vmax.xlane.f32.xlu0 %v541_v21  ;;  %545 = vmax.xlane.f32.xlu1 %v544_v22  ;;  %v428_v26 = vpop.f32.mrb[14].mxu0 }
 0x2da   :  { %v1257_v27 = vpop.f32.mrb[11].mxu1  ;;  %v1263_v28 = vpop.f32.mrb[15].mxu0 }
 0x2df   :  { %v1672_v29 = vpop.f32.mrb[12].mxu1  ;;  %v523_v30 = vpop.f32.mrb[16].mxu0 }
 0x2e0   :  { %v1268_v31 = vpop.f32.mrb[13].mxu1  ;;  %v1274_v34 = vpop.f32.mrb[17].mxu0  ;;  %v547_v35 = vsel %vm139_vm2, %v1672_v29, -inf  ;;  %v550_v36 = vsel %vm139_vm2, %v523_v30, -inf }
 0x2e1   :  { %v477_v39 = vpop.f32.mrb[14].mxu1  ;;  %548 = vmax.xlane.f32.xlu0 %v547_v35  ;;  %551 = vmax.xlane.f32.xlu1 %v550_v36  ;;  %v526_v40 = vpop.f32.mrb[18].mxu0 }
 0x2e2   :  { %v1269_v41 = vpop.f32.mrb[15].mxu1  ;;  %v1275_v42 = vpop.f32.mrb[19].mxu0 }
 0x2eb   :  { %v531_v43 = vpop.xlane.xlu1 %530 }
 0x2ec   :  { %v553_v45 = vsub.f32 %v180_v55, %v531_v43 }
 0x2ee   :  { %v561_v47 = vmul.f32 1.442695, %v553_v45 }
 0x2ef   :  { %v534_v44 = vpop.xlane.xlu0 %533 }
 0x2f0   :  { %v554_v46 = vsub.f32 %v229_v60, %v534_v44  ;;  %1377 = vpow2.f32 %v561_v47 }
 0x2f2   :  { %722 = vrot.lane.b32.xlu1 %v1589_v25, %s1495_s2  ;;  %v563_v48 = vmul.f32 1.442695, %v554_v46 }
 0x2f4   :  { %1379 = vpow2.f32 %v563_v48 }
 0x2f7   :  { %770 = vrot.lane.b32.xlu0 %v1587_v24, %s1495_s2 }
 0x2fa   :  { %v1378_v49 = vpop.eup %1377 }
 0x2fb   :  { %v577_v51 = vsel %vm139_vm2, %v1378_v49, 0.0 }
 0x2fe   :  { %v1380_v50 = vpop.eup %1379 }
 0x2ff   :  { %v580_v52 = vsel %vm139_vm2, %v1380_v50, 0.0 }
 0x316   :  { %578 = vadd.xlane.f32.xlu0 %v577_v51  ;;  %581 = vadd.xlane.f32.xlu1 %v580_v52 }
 0x327   :  { %818 = vrot.lane.b32.xlu1 %v1598_v33, %s1495_s2 }
 0x35e   :  { %v537_v24 = vpop.xlane.xlu0 %536  ;;  %v540_v25 = vpop.xlane.xlu1 %539 }
 0x35f   :  { %v555_v53 = vsub.f32 %v278_v2, %v537_v24  ;;  %v556_v54 = vsub.f32 %v327_v3, %v540_v25 }
 0x361   :  { %v565_v55 = vmul.f32 1.442695, %v555_v53  ;;  %v567_v56 = vmul.f32 1.442695, %v556_v54 }
 0x363   :  { %1381 = vpow2.f32 %v565_v55 }
 0x364   :  { %1383 = vpow2.f32 %v567_v56 }
 0x366   :  { %v546_v57 = vpop.xlane.xlu1 %545  ;;  %v543_v12 = vpop.xlane.xlu0 %542 }
 0x367   :  { %v558_v58 = vsub.f32 %v425_v18, %v546_v57  ;;  %v557_v13 = vsub.f32 %v1667_v17, %v543_v12 }
 0x369   :  { %v571_v59 = vmul.f32 1.442695, %v558_v58  ;;  %v569_v15 = vmul.f32 1.442695, %v557_v13 }
 0x36b   :  { %1385 = vpow2.f32 %v571_v59 }
 0x36d   :  { %v1685_v60 = vpop.eup %1381 }
 0x36e   :  { %v1687_v61 = vpop.eup %1383  ;;  %v552_v62 = vpop.xlane.xlu1 %551  ;;  %v583_v33 = vsel %vm139_vm2, %v1685_v60, 0.0 }
 0x36f   :  { %v560_v63 = vsub.f32 %v523_v30, %v552_v62  ;;  %584 = vadd.xlane.f32.xlu0 %v583_v33  ;;  %v586_v1 = vsel %vm139_vm2, %v1687_v61, 0.0  ;;  %v549_v14 = vpop.xlane.xlu0 %548 }
 0x370   :  { %587 = vadd.xlane.f32.xlu1 %v586_v1  ;;  %v559_v16 = vsub.f32 %v1672_v29, %v549_v14 }
 0x371   :  { %v575_v2 = vmul.f32 1.442695, %v560_v63 }
 0x372   :  { %v573_v18 = vmul.f32 1.442695, %v559_v16  ;;  %v723_v20 = vpop.permute.xlu1 %722 }
 0x373   :  { %1387 = vpow2.f32 %v575_v2  ;;  %v771_v19 = vpop.permute.xlu0 %770  ;;  %v728_v34 = vsel %vm630_vm3, %v723_v20, 0 }
 0x374   :  { %1389 = vpow2.f32 %v569_v15  ;;  %v776_v35 = vsel %vm630_vm3, %v771_v19, 0 }
 0x375   :  { %v1693_v3 = vpop.eup %1385  ;;  %1391 = vpow2.f32 %v573_v18 }
 0x376   :  { %v592_v5 = vsel %vm139_vm2, %v1693_v3, 0.0 }
 0x377   :  { %593 = vadd.xlane.f32.xlu1 %v592_v5 }
 0x37d   :  { %v1697_v9 = vpop.eup %1387 }
 0x37e   :  { %v598_v11 = vsel %vm139_vm2, %v1697_v9, 0.0  ;;  %v1707_v21 = vpop.eup %1389 }
 0x37f   :  { %599 = vadd.xlane.f32.xlu1 %v598_v11  ;;  %v1711_v17 = vpop.eup %1391 }
 0x385   :  { %866 = vrot.lane.b32.xlu0 %v1596_v32, %s1495_s2  ;;  %v589_v32 = vsel %vm139_vm2, %v1707_v21, 0.0 }
 0x390   :  { %914 = vrot.lane.b32.xlu1 %v1606_v37, %s1495_s2  ;;  %v595_v37 = vsel %vm139_vm2, %v1711_v17, 0.0 }
 0x394   :  { %1045 = vrot.lane.b32.xlu1 %v1561_v4, %s1496_s19 }
 0x3a3   :  { %v579_v22 = vpop.xlane.xlu0 %578  ;;  %v582_v23 = vpop.xlane.xlu1 %581 }
 0x3a4   :  { %1393 = vrcp.f32 %v579_v22  ;;  %590 = vadd.xlane.f32.xlu0 %v589_v32 }
 0x3a5   :  { %1395 = vrcp.f32 %v582_v23 }
 0x3a7   :  { %v819_v36 = vpop.permute.xlu1 %818 }
 0x3a8   :  { %596 = vadd.xlane.f32.xlu0 %v595_v37 }
 0x3ae   :  { %v1394_v26 = vpop.eup %1393 }
 0x3af   :  { %v1396_v27 = vpop.eup %1395  ;;  %v609_v28 = vmul.f32 %v1394_v26, %v1378_v49  ;;  %v824_v49 = vsel %vm630_vm3, %v819_v36, 0 }
 0x3b0   :  { %v610_v29 = vmul.f32 %v1396_v27, %v1380_v50 }
 0x3b1   :  { %v617_v30 = vpack.c.bf16 %v609_v28, %v609_v28 }
 0x3b2   :  { %v618_v31 = vpack.c.bf16 %v610_v29, %v610_v29 }
 0x3b3   :  { %1279 = vmatmul.mubr.msk.bf16.vlgmr.msra.gmra.mrb[16].mxu1 %vm139_vm2, %v617_v30 }
 0x3b4   :  { %1285 = vmatmul.mubr.msk.bf16.vlgmr.msra.gmra.mrb[20].mxu0 %vm139_vm2, %v618_v31  ;;  %1289 = vmatpush3.bf16.msra.mxu1 %v728_v34 }
 0x3b5   :  { %1295 = vmatpush3.bf16.msra.mxu0 %v776_v35  ;;  %1290 = vmatprep.mubr.msk.bf16.mxu1 %vm1490_vm0, %v1489_v0 }
 0x3b6   :  { %1296 = vmatprep.mubr.msk.bf16.mxu0 %vm1490_vm0, %v1489_v0  ;;  %1300 = vmatprep.subr.bf16.mxu1 %v1489_v0 }
 0x3b7   :  { %1306 = vmatprep.subr.bf16.mxu0 %v1489_v0 }
 0x3be   :  { %962 = vrot.lane.b32.xlu0 %v1609_v38, %s1495_s2 }
 0x3fc   :  { %v585_v39 = vpop.xlane.xlu0 %584 }
 0x3fd   :  { %1397 = vrcp.f32 %v585_v39  ;;  %v588_v40 = vpop.xlane.xlu1 %587 }
 0x3fe   :  { %1399 = vrcp.f32 %v588_v40 }
 0x400   :  { %v867_v46 = vpop.permute.xlu0 %866 }
 0x401   :  { %v872_v38 = vsel %vm630_vm3, %v867_v46, 0 }
 0x404   :  { %v594_v41 = vpop.xlane.xlu1 %593 }
 0x405   :  { %1401 = vrcp.f32 %v594_v41 }
 0x407   :  { %v1398_v42 = vpop.eup %1397 }
 0x408   :  { %v1400_v43 = vpop.eup %1399  ;;  %v611_v44 = vmul.f32 %v1398_v42, %v1685_v60 }
 0x409   :  { %v612_v45 = vmul.f32 %v1400_v43, %v1687_v61 }
 0x40a   :  { %v619_v47 = vpack.c.bf16 %v611_v44, %v611_v44 }
 0x40b   :  { %v620_v48 = vpack.c.bf16 %v612_v45, %v612_v45 }
 0x40c   :  { %1291 = vmatmul.mubr.msk.bf16.vlgmr.msra.gmra.mrb[20].mxu1 %vm139_vm2, %v619_v47  ;;  %v600_v24 = vpop.xlane.xlu1 %599 }
 0x40d   :  { %1297 = vmatmul.mubr.msk.bf16.vlgmr.msra.gmra.mrb[24].mxu0 %vm139_vm2, %v620_v48  ;;  %1301 = vmatpush3.bf16.msra.mxu1 %v824_v49  ;;  %1403 = vrcp.f32 %v600_v24 }
 0x40e   :  { %1307 = vmatpush3.bf16.msra.mxu0 %v872_v38  ;;  %1308 = vmatprep.mubr.msk.bf16.mxu0 %vm1490_vm0, %v1489_v0 }
 0x40f   :  { %1318 = vmatprep.subr.bf16.mxu0 %v1489_v0  ;;  %1302 = vmatprep.mubr.msk.bf16.mxu1 %vm1490_vm0, %v1489_v0  ;;  %v1402_v50 = vpop.eup %1401 }
 0x410   :  { %1312 = vmatprep.subr.bf16.mxu1 %v1489_v0  ;;  %v614_v51 = vmul.f32 %v1402_v50, %v1693_v3  ;;  %v915_v61 = vpop.permute.xlu1 %914 }
 0x411   :  { %v920_v63 = vsel %vm630_vm3, %v915_v61, 0 }
 0x412   :  { %v622_v52 = vpack.c.bf16 %v614_v51, %v614_v51 }
 0x414   :  { %v1046_v29 = vpop.permute.xlu1 %1045 }
 0x415   :  { %1309 = vmatmul.mubr.msk.bf16.vlgmr.msra.gmra.mrb[28].mxu0 %vm139_vm2, %v622_v52 }
 0x416   :  { %1320 = vmatprep.mubr.msk.bf16.mxu0 %vm1490_vm0, %v1489_v0 }
 0x417   :  { %v1404_v53 = vpop.eup %1403 }
 0x418   :  { %v616_v55 = vmul.f32 %v1404_v53, %v1697_v9 }
 0x41a   :  { %v624_v59 = vpack.c.bf16 %v616_v55, %v616_v55 }
 0x431   :  { %v591_v25 = vpop.xlane.xlu0 %590 }
 0x432   :  { %1405 = vrcp.f32 %v591_v25 }
 0x435   :  { %v597_v54 = vpop.xlane.xlu0 %596 }
 0x436   :  { %1407 = vrcp.f32 %v597_v54 }
 0x439   :  { %v963_v56 = vpop.permute.xlu0 %962 }
 0x43a   :  { %v968_v57 = vsel %vm630_vm3, %v963_v56, 0 }
 0x43b   :  { %1319 = vmatpush3.bf16.msra.mxu0 %v968_v57 }
 0x43c   :  { %v1406_v58 = vpop.eup %1405 }
 0x43d   :  { %v613_v60 = vmul.f32 %v1406_v58, %v1707_v21 }
 0x43e   :  { %1321 = vmatmul.mubr.msk.bf16.vlgmr.msra.gmra.mrb[32].mxu0 %vm139_vm2, %v624_v59 }
 0x43f   :  { %v621_v62 = vpack.c.bf16 %v613_v60, %v613_v60 }
 0x440   :  { %v1408_v33 = vpop.eup %1407 }
 0x441   :  { %1303 = vmatmul.mubr.msk.bf16.vlgmr.msra.gmra.mrb[24].mxu1 %vm139_vm2, %v621_v62  ;;  %v615_v1 = vmul.f32 %v1408_v33, %v1711_v17 }
 0x442   :  { %1313 = vmatpush3.bf16.msra.mxu1 %v920_v63  ;;  %1314 = vmatprep.mubr.msk.bf16.mxu1 %vm1490_vm0, %v1489_v0 }
 0x443   :  { %1324 = vmatprep.subr.bf16.mxu1 %v1489_v0  ;;  %v623_v2 = vpack.c.bf16 %v615_v1, %v615_v1 }
 0x449   :  { %1315 = vmatmul.mubr.msk.bf16.vlgmr.msra.gmra.mrb[28].mxu1 %vm139_vm2, %v623_v2 }
 0x44a   :  { %1328 = vmatprep.mubr.msk.bf16.mxu1 %vm1490_vm0, %v1489_v0  ;;  %1325 = vmatpush3.bf16.msra.mxu1 %v1046_v29 }
 0x44b   :  { %1326 = vmatprep.subr.bf16.mxu1 %v1489_v0 }
 0x486   :  { %v668_v3 = vpop.f32.mrb[16].mxu1 }
 0x487   :  { %v716_v5 = vpop.f32.mrb[20].mxu0  ;;  %v1280_v9 = vpop.f32.mrb[17].mxu1 }
 0x488   :  { %v1286_v11 = vpop.f32.mrb[21].mxu0  ;;  %v671_v12 = vpop.f32.mrb[18].mxu1 }
 0x489   :  { %v719_v13 = vpop.f32.mrb[22].mxu0  ;;  %v1281_v14 = vpop.f32.mrb[19].mxu1 }
 0x48a   :  { %v1287_v15 = vpop.f32.mrb[23].mxu0 }
 0x4df   :  { %v764_v16 = vpop.f32.mrb[20].mxu1 }
 0x4e0   :  { %v812_v18 = vpop.f32.mrb[24].mxu0  ;;  %v1292_v19 = vpop.f32.mrb[21].mxu1 }
 0x4e1   :  { %v1362_v20 = vpack.i.bf16 %v812_v18, %v764_v16  ;;  %v1298_v21 = vpop.f32.mrb[25].mxu0  ;;  %v767_v22 = vpop.f32.mrb[22].mxu1 }
 0x4e2   :  { %v815_v23 = vpop.f32.mrb[26].mxu0  ;;  %v1293_v32 = vpop.f32.mrb[23].mxu1 }
 0x4e3   :  { %1363 = vrot.lane.b32.xlu0 %v1362_v20, %s1487_s26  ;;  %v1299_v17 = vpop.f32.mrb[27].mxu0 }
 0x4e8   :  { %v908_v37 = vpop.f32.mrb[28].mxu0 }
 0x4e9   :  { %v1310_v26 = vpop.f32.mrb[29].mxu0 }
 0x4ea   :  { %v911_v27 = vpop.f32.mrb[30].mxu0 }
 0x4eb   :  { %v1311_v28 = vpop.f32.mrb[31].mxu0 }
 0x4ec   :  { %v1181_v28 = vld [vmem:[%s1799_s3 + $0x1] ss:$0 sm:$0xff] }
 0x511   :  { %v1004_v4 = vpop.f32.mrb[32].mxu0 }
 0x512   :  { %v1322_v30 = vpop.f32.mrb[33].mxu0 }
 0x513   :  { %v1007_v31 = vpop.f32.mrb[34].mxu0 }
 0x514   :  { %v860_v34 = vpop.f32.mrb[24].mxu1  ;;  %v1323_v35 = vpop.f32.mrb[35].mxu0 }
 0x515   :  { %v1367_v36 = vpack.i.bf16 %v908_v37, %v860_v34  ;;  %v1304_v39 = vpop.f32.mrb[25].mxu1  ;;  %v1180_v37 = vld [vmem:[%s1799_s3] ss:$0 sm:$0xff] }
 0x516   :  { %v863_v40 = vpop.f32.mrb[26].mxu1 }
 0x517   :  { %v1305_v41 = vpop.f32.mrb[27].mxu1  ;;  %1368 = vrot.lane.b32.xlu1 %v1367_v36, %s1497_s20 }
 0x51b   :  { %1047 = vrot.lane.b32.xlu1 %v1564_v6, %s1496_s19 }
 0x51c   :  { %v956_v42 = vpop.f32.mrb[28].mxu1 }
 0x51d   :  { %v1372_v43 = vpack.i.bf16 %v1004_v4, %v956_v42  ;;  %v1316_v44 = vpop.f32.mrb[29].mxu1 }
 0x51e   :  { %v959_v45 = vpop.f32.mrb[30].mxu1 }
 0x51f   :  { %v1317_v46 = vpop.f32.mrb[31].mxu1  ;;  %1373 = vrot.lane.b32.xlu0 %v1372_v43, %s1498_s21 }
 0x523   :  { %1051 = vrot.lane.b32.xlu0 %v1581_v10, %s1496_s19 }
 0x555   :  { %v1364_v47 = vpop.permute.xlu0 %1363 }
 0x556   :  { %v1366_v49 = vunpack.i.h.bf16 %v1364_v47  ;;  %v1365_v38 = vunpack.i.l.bf16 %v1364_v47 }
 0x558   :  { %v1035_v52 = vsel %vm139_vm2, %v716_v5, %v1366_v49  ;;  %v1034_v24 = vsel %vm139_vm2, %v668_v3, %v1365_v38 }
 0x589   :  { %v1369_v0 = vpop.permute.xlu1 %1368 }
 0x58a   :  { %v1371_v50 = vunpack.i.h.bf16 %v1369_v0  ;;  %v1370_v51 = vunpack.i.l.bf16 %v1369_v0 }
 0x58c   :  { %v1038_v54 = vsel %vm1036_vm4, %v1035_v52, %v1371_v50  ;;  %v1037_v55 = vsel %vm1036_vm4, %v1034_v24, %v1370_v51 }
 0x58d   :  { %v1048_v48 = vpop.permute.xlu1 %1047 }
 0x58e   :  { %1327 = vmatpush3.bf16.msra.mxu1 %v1048_v48 }
 0x591   :  { %v1374_v6 = vpop.permute.xlu0 %1373 }
 0x592   :  { %v1376_v25 = vunpack.i.h.bf16 %v1374_v6  ;;  %v1375_v53 = vunpack.i.l.bf16 %v1374_v6 }
 0x594   :  { %v1041_v10 = vsel %vm1039_vm5, %v1038_v54, %v1376_v25  ;;  %v1040_v56 = vsel %vm1039_vm5, %v1037_v55, %v1375_v53 }
 0x595   :  { %v1042_v57 = vpack.c.bf16 %v1041_v10, %v1040_v56  ;;  %v1052_v58 = vpop.permute.xlu0 %1051 }
 0x597   :  { %1329 = vmatmul.mubr.msk.bf16.vlgmr.msra.gmra.mrb[32].mxu1 %vm63_vm1, %v1042_v57 }
 0x66a   :  { %v1091_v59 = vpop.f32.mrb[32].mxu1 }
 0x66b   :  { %v1092_v60 = vadd.f32 %v1091_v59, %v1052_v58  ;;  %v1330_v61 = vpop.f32.mrb[33].mxu1 }
 0x66c   :  { %v1094_v62 = vpop.f32.mrb[34].mxu1 }
 0x66d   :  { %v1095_v33 = vadd.f32 %v1094_v62, %v1052_v58  ;;  %v1331_v63 = vpop.f32.mrb[35].mxu1  ;;  %v1098_v1 = vadd.f32 %v1092_v60, %v1566_v7 }
 0x66f   :  { %v1100_v2 = vsel %vm63_vm1, %v1098_v1, 0.0  ;;  %v1099_v3 = vadd.f32 %v1095_v33, %v1568_v8 }
 0x670   :  { %1101 = vadd.xlane.f32.xlu1 %v1100_v2 }
 0x671   :  { %v1103_v5 = vsel %vm63_vm1, %v1099_v3, 0.0 }
 0x672   :  { %1104 = vadd.xlane.f32.xlu0 %v1103_v5 }
 0x6fd   :  { %v1102_v9 = vpop.xlane.xlu1 %1101 }
 0x6fe   :  { %v1107_v11 = vmul.f32 0.03125, %v1102_v9 }
 0x6ff   :  { %v1105_v12 = vpop.xlane.xlu0 %1104 }
 0x700   :  { %v1109_v13 = vsub.f32 %v1098_v1, %v1107_v11  ;;  %v1108_v14 = vmul.f32 0.03125, %v1105_v12 }
 0x702   :  { %v1110_v15 = vsub.f32 %v1099_v3, %v1108_v14  ;;  %v1111_v16 = vmul.f32 %v1109_v13, %v1109_v13 }
 0x704   :  { %v1113_v18 = vsel %vm63_vm1, %v1111_v16, 0.0  ;;  %v1112_v19 = vmul.f32 %v1110_v15, %v1110_v15 }
 0x705   :  { %1114 = vadd.xlane.f32.xlu0 %v1113_v18 }
 0x706   :  { %v1116_v7 = vsel %vm63_vm1, %v1112_v19, 0.0 }
 0x707   :  { %1117 = vadd.xlane.f32.xlu1 %v1116_v7 }
 0x792   :  { %v1115_v20 = vpop.xlane.xlu0 %1114 }
 0x793   :  { %v1119_v8 = vmul.f32 0.03125, %v1115_v20 }
 0x794   :  { %v1118_v21 = vpop.xlane.xlu1 %1117 }
 0x795   :  { %v1121_v22 = vadd.f32 1e-12, %v1119_v8  ;;  %v1120_v23 = vmul.f32 0.03125, %v1118_v21 }
 0x797   :  { %1409 = vrsqrt.f32 %v1121_v22  ;;  %v1122_v32 = vadd.f32 1e-12, %v1120_v23 }
 0x799   :  { %1411 = vrsqrt.f32 %v1122_v32 }
 0x7a1   :  { %v1410_v17 = vpop.eup %1409 }
 0x7a2   :  { %v1127_v26 = vmul.f32 %v1410_v17, %v1109_v13 }
 0x7a3   :  { %v1412_v27 = vpop.eup %1411 }
 0x7a4   :  { %v1128_v29 = vmul.f32 %v1412_v27, %v1110_v15  ;;  %v1133_v4 = vmul.f32 %v1180_v37, %v1127_v26 }
 0x7a6   :  { %v1134_v30 = vmul.f32 %v1180_v37, %v1128_v29  ;;  %v1139_v31 = vadd.f32 %v1181_v28, %v1133_v4 }
 0x7a8   :  { %v1140_v34 = vadd.f32 %v1181_v28, %v1134_v30  ;;  %1141 = vst.msk [vmem:[#allocation7] sm:$0xff] %vm63_vm1, %v1139_v31 }
 0x7aa   :  { %1142 = vst.msk [vmem:[#allocation7 + $0x8] sm:$0xff] %vm63_vm1, %v1140_v34 }
 0x7ab   :  { %1468 = shalt.err (!%p1465_p6)
}
 0x7ac   :  { %s1469_s6 = scalar_lea.hbm %s1800_s4, 256 }
 0x7ad   :  { %p1470_p7 = scmp.ne.s32.totalorder %s1800_s4, %s1469_s6  ;;  %p1473_p8 = scmp.lt.u32.totalorder %s1469_s6, %s1800_s4 }
 0x7af   :  { %p1475_p9 = pnand %p1473_p8, %p1470_p7 }
 0x7b1   :  { %1478 = shalt.err (!%p1475_p9)
}
 0x7b2   :  { %1154 = dma.vmem_to_hbm [thread:$0]  %s1149_s29, 256, %s1800_s4, [#allocation4], %s1486_s25, %s1486_s25, %s1487_s26  }
 0x7b3   :  { %1483 = dma.done.wait [#allocation4], 256  }
 0x7b4   :  { %1484 = vsyncadd [#allocation4], 4294967040 }
 0x7b5   :  { %1158 = vsyncpa [#allocation3], 1 }
 0x7b6   :  { %1159 = vsyncpa [#allocation6], 1 }
 0x7b7   :  { %1160 = vsyncpa [#allocation4], 1 }

</bundles_post_ra>
